<compile_context>
chip_gen: v7x
topology: tpu7x:2x2x1
jax: 0.10.0
libtpu: 0.0.40
codegen_flags: <defaults>
</compile_context>

<pallas_src>
import functools

import jax
import jax.numpy as jnp
from jax.experimental import pallas as pl
from jax.experimental.pallas import tpu as pltpu


def _round_up(x, m):
    return ((x + m - 1) // m) * m


def _choose_batch_tile(batch, requested_tile, min_grid=2):
    """Pick (tile, padded_batch).

    * padded_batch is the minimal sublane-aligned batch (multiple of 8), so the
      jnp.pad copy of x is skipped whenever batch is already a multiple of 8.
    * tile is a multiple of 8, divides padded_batch exactly, and is capped at
      requested_tile.
    * when padded_batch allows it, the grid gets at least `min_grid` steps so
      the ("parallel",) grid axis shards across v7x's two TensorCores.
    """
    padded = _round_up(max(batch, 1), 8)
    tile = max(8, min(requested_tile, padded))
    tile = (tile // 8) * 8
    while padded % tile:
        tile -= 8
    if padded // tile < min_grid and padded >= min_grid * 8:
        tile = max(8, ((padded // min_grid) // 8) * 8)
        while padded % tile:
            tile -= 8
    return tile, padded


def make_encoder_kernel(num_layers):
    """Kernel: x, w1, b1, [wl_i, bl_i]*num_layers, wh, bh -> fused out slab."""

    def kernel(*refs):
        x_ref = refs[0]
        w1_ref, b1_ref = refs[1], refs[2]
        layer_refs = refs[3:3 + 2 * num_layers]
        wh_ref, bh_ref = refs[3 + 2 * num_layers], refs[4 + 2 * num_layers]
        out_ref = refs[5 + 2 * num_layers]

        def mm(a, w_ref):
            # Weights are pre-cast to the MXU compute dtype (bf16 by default);
            # only the activations get a cheap VPU cast here.  Accumulation is
            # always fp32 on the MXU.
            return jnp.dot(a.astype(w_ref.dtype), w_ref[...],
                           preferred_element_type=jnp.float32)

        x = x_ref[...]

        # hidden = relu(fc1(x))   (hidden padded to 128 lanes; padded columns
        # stay exactly zero through the whole network)
        h = jnp.maximum(mm(x, w1_ref) + b1_ref[...], 0.0)

        # residual relu layers: hidden = hidden + relu(layer(hidden))
        for li in range(num_layers):
            w_ref, b_ref = layer_refs[2 * li], layer_refs[2 * li + 1]
            h = h + jnp.maximum(mm(h, w_ref) + b_ref[...], 0.0)

        # fused mean|logvar head -> single lane-dense (tile, 128k) store
        out_ref[...] = (mm(h, wh_ref) + bh_ref[...]).astype(out_ref.dtype)

    return kernel


def encoder_forward(x, kparams, *, latent_size, num_layers=3,
                    batch_tile=256, min_grid=2, out_dtype=jnp.float32,
                    single_buffer_weights=False):
    """kparams: output of prepare_kernel_params (padded + fused, pre-cast)."""
    batch, input_size = x.shape
    hp = kparams["w1"].shape[1]        # padded hidden size (multiple of 128)
    lp = kparams["wh"].shape[1]        # padded fused-head size (multiple of 128)

    tile, padded_batch = _choose_batch_tile(batch, batch_tile, min_grid)
    if padded_batch != batch:
        # Only ever a < 8-row pad; skipped entirely when batch % 8 == 0.
        x = jnp.pad(x, ((0, padded_batch - batch), (0, 0)))
    grid = (padded_batch // tile,)

    weight_args = [kparams["w1"], kparams["b1"]]
    for i in range(num_layers):
        weight_args += [kparams[f"wl{i}"], kparams[f"bl{i}"]]
    weight_args += [kparams["wh"], kparams["bh"]]

    def w_spec(shape):
        # Weights/biases: full-array blocks, constant index map -> DMA'd once
        # and VMEM-resident across all batch tiles.  Optionally single-buffered
        # (useful once hidden grows and VMEM gets tight, esp. v7x 64 MiB).
        if single_buffer_weights:
            return pl.BlockSpec(shape, lambda i: (0, 0),
                                pipeline_mode=pl.Buffered(1))
        return pl.BlockSpec(shape, lambda i: (0, 0))

    weight_specs = [w_spec(w.shape) for w in weight_args]

    flops = 2 * padded_batch * (input_size * hp + num_layers * hp * hp + hp * lp)
    weight_bytes = sum(int(w.size) * jnp.dtype(w.dtype).itemsize
                       for w in weight_args)
    out_itemsize = jnp.dtype(out_dtype).itemsize
    bytes_accessed = (int(x.size) * jnp.dtype(x.dtype).itemsize
                      + padded_batch * lp * out_itemsize + weight_bytes)
    cost = pl.CostEstimate(flops=flops, transcendentals=0,
                           bytes_accessed=bytes_accessed)

    # Explicit scoped-VMEM budget: double-buffered weights + double-buffered
    # per-tile I/O + headroom, clamped to a safe range for v5e/v6e/v7x.
    io_tile_bytes = tile * (input_size * jnp.dtype(x.dtype).itemsize
                            + lp * out_itemsize)
    vmem_limit = int(min(max(2 * weight_bytes + 2 * io_tile_bytes + (8 << 20),
                             32 << 20), 64 << 20))

    out = pl.pallas_call(
        make_encoder_kernel(num_layers),
        out_shape=jax.ShapeDtypeStruct((padded_batch, lp), out_dtype),
        grid_spec=pltpu.PrefetchScalarGridSpec(
            num_scalar_prefetch=0,
            grid=grid,
            in_specs=[pl.BlockSpec((tile, input_size), lambda i: (i, 0))]
                     + weight_specs,
            out_specs=pl.BlockSpec((tile, lp), lambda i: (i, 0)),
        ),
        compiler_params=pltpu.CompilerParams(
            dimension_semantics=("parallel",),
            vmem_limit_bytes=vmem_limit),
        cost_estimate=cost,
    )(x, *weight_args)

    mean = out[:batch, :latent_size]
    logvar = out[:batch, latent_size:2 * latent_size]
    return mean, logvar


def init_raw_params(key, input_size, hidden_size, latent_size, num_layers=3):
    """Unpadded params matching nn.Linear shapes, stored transposed (in, out);
    biases as (1, out)."""
    keys = jax.random.split(key, 2 * (2 + num_layers + 2))
    kit = iter(keys)

    def linear(in_f, out_f):
        bound = 1.0 / jnp.sqrt(in_f)
        w = jax.random.uniform(next(kit), (in_f, out_f), jnp.float32, -bound, bound)
        b = jax.random.uniform(next(kit), (1, out_f), jnp.float32, -bound, bound)
        return w, b

    p = {}
    p["w1"], p["b1"] = linear(input_size, hidden_size)
    for i in range(num_layers):
        p[f"wl{i}"], p[f"bl{i}"] = linear(hidden_size, hidden_size)
    p["wm"], p["bm"] = linear(hidden_size, latent_size)
    p["wv"], p["bv"] = linear(hidden_size, latent_size)
    return p


def prepare_kernel_params(raw, num_layers=3, lane=128,
                          compute_dtype=jnp.bfloat16):
    """Zero-pad hidden dim to a multiple of 128, fuse mean|logvar heads into a
    single lane-dense (hidden_pad, 128k) weight, and pre-cast the matmul
    weights to `compute_dtype` (biases stay fp32; they are added after the
    fp32-accumulated matmul).  Padded hidden columns stay exactly zero through
    ReLU/residual, so numerics match the unpadded model."""
    hidden = raw["w1"].shape[1]
    latent = raw["wm"].shape[1]
    hp = _round_up(hidden, lane)
    lp = _round_up(2 * latent, lane)

    def padw(a, rows, cols):
        a = jnp.pad(a, ((0, rows - a.shape[0]), (0, cols - a.shape[1])))
        return a.astype(compute_dtype)

    def padb(a, cols):
        return jnp.pad(a, ((0, 0), (0, cols - a.shape[1]))).astype(jnp.float32)

    kp = {}
    kp["w1"] = padw(raw["w1"], raw["w1"].shape[0], hp)
    kp["b1"] = padb(raw["b1"], hp)
    for i in range(num_layers):
        kp[f"wl{i}"] = padw(raw[f"wl{i}"], hp, hp)
        kp[f"bl{i}"] = padb(raw[f"bl{i}"], hp)
    wh = jnp.concatenate([raw["wm"], raw["wv"]], axis=1)   # (hidden, 2*latent)
    bh = jnp.concatenate([raw["bm"], raw["bv"]], axis=1)   # (1, 2*latent)
    kp["wh"] = padw(wh, hp, lp)
    kp["bh"] = padb(bh, lp)
    return kp


def encoder_ref(x, p, num_layers=3, compute_dtype=jnp.float32):
    """Pure-JAX reference of the PyTorch forward pass (unpadded weights).
    `compute_dtype` lets the reference mirror the kernel's MXU operand dtype
    while accumulating in fp32."""
    def mm(a, w):
        return jnp.dot(a.astype(compute_dtype), w.astype(compute_dtype),
                       preferred_element_type=jnp.float32)

    h = jnp.maximum(mm(x, p["w1"]) + p["b1"], 0.0)
    for i in range(num_layers):
        h = h + jnp.maximum(mm(h, p[f"wl{i}"]) + p[f"bl{i}"], 0.0)
    return mm(h, p["wm"]) + p["bm"], mm(h, p["wv"]) + p["bv"]


if __name__ == "__main__":
    input_size, hidden_size, latent_size, num_layers = 32, 64, 16, 3

    key = jax.random.PRNGKey(0)
    k_x, k_p = jax.random.split(key)
    raw = init_raw_params(k_p, input_size, hidden_size, latent_size, num_layers)

    kp_bf16 = prepare_kernel_params(raw, num_layers, compute_dtype=jnp.bfloat16)
    kp_f32 = prepare_kernel_params(raw, num_layers, compute_dtype=jnp.float32)

    fwd = jax.jit(functools.partial(encoder_forward,
                                    latent_size=latent_size,
                                    num_layers=num_layers))

    # --- small batch, bf16 MXU operands (default fast path) ---
    batch = 8
    x = jax.random.normal(k_x, (batch, input_size), jnp.float32)
    mean, logvar = fwd(x, kp_bf16)
    jax.block_until_ready((mean, logvar))
    assert mean.shape == (batch, latent_size)
    assert logvar.shape == (batch, latent_size)
    rm_bf, rv_bf = encoder_ref(x, raw, num_layers, compute_dtype=jnp.bfloat16)
    assert jnp.allclose(mean, rm_bf, atol=1e-2, rtol=1e-2)
    assert jnp.allclose(logvar, rv_bf, atol=1e-2, rtol=1e-2)

    # --- exactness check: fp32 MXU operands vs pure-fp32 reference ---
    rm_f, rv_f = encoder_ref(x, raw, num_layers, compute_dtype=jnp.float32)
    mean32, logvar32 = fwd(x, kp_f32)
    jax.block_until_ready((mean32, logvar32))
    assert jnp.allclose(mean32, rm_f, atol=1e-4, rtol=1e-4)
    assert jnp.allclose(logvar32, rv_f, atol=1e-4, rtol=1e-4)

    # --- larger batch exercising the multi-step ("parallel") batch grid ---
    batch2 = 256
    x2 = jax.random.normal(jax.random.PRNGKey(1), (batch2, input_size),
                           jnp.float32)
    m2, v2 = fwd(x2, kp_bf16)
    jax.block_until_ready((m2, v2))
    rm2, rv2 = encoder_ref(x2, raw, num_layers, compute_dtype=jnp.bfloat16)
    assert m2.shape == (batch2, latent_size)
    assert jnp.allclose(m2, rm2, atol=1e-2, rtol=1e-2)
    assert jnp.allclose(v2, rv2, atol=1e-2, rtol=1e-2)

    # --- ragged batch (not a multiple of 8): minimal pad + output slice ---
    batch3 = 13
    x3 = jax.random.normal(jax.random.PRNGKey(2), (batch3, input_size),
                           jnp.float32)
    m3, v3 = fwd(x3, kp_bf16)
    jax.block_until_ready((m3, v3))
    rm3, rv3 = encoder_ref(x3, raw, num_layers, compute_dtype=jnp.bfloat16)
    assert m3.shape == (batch3, latent_size)
    assert jnp.allclose(m3, rm3, atol=1e-2, rtol=1e-2)
    assert jnp.allclose(v3, rv3, atol=1e-2, rtol=1e-2)

    print("KERNEL_OK")
</pallas_src>

<mosaic_0001>
module attributes {stable_mosaic.version = 11 : i64} {
  func.func @kernel(%arg0: i32, %arg1: memref<8x32xf32, #tpu.memory_space<vmem>>, %arg2: memref<32x128xbf16, #tpu.memory_space<vmem>>, %arg3: memref<1x128xf32, #tpu.memory_space<vmem>>, %arg4: memref<128x128xbf16, #tpu.memory_space<vmem>>, %arg5: memref<1x128xf32, #tpu.memory_space<vmem>>, %arg6: memref<128x128xbf16, #tpu.memory_space<vmem>>, %arg7: memref<1x128xf32, #tpu.memory_space<vmem>>, %arg8: memref<128x128xbf16, #tpu.memory_space<vmem>>, %arg9: memref<1x128xf32, #tpu.memory_space<vmem>>, %arg10: memref<128x128xbf16, #tpu.memory_space<vmem>>, %arg11: memref<1x128xf32, #tpu.memory_space<vmem>>, %arg12: memref<8x128xf32, #tpu.memory_space<vmem>>) attributes {dimension_semantics = [#tpu.dimension_semantics<parallel>], iteration_bounds = array<i64: 1>, scalar_prefetch = 0 : i64, scratch_operands = 0 : i64, tpu.core_type = #tpu.core_type<tc>, window_params = [{transform_indices = @transform_0, window_bounds = array<i64: 8, 32>}, {pipeline_mode = #tpu.pipeline_mode<synchronous>, transform_indices = @transform_1, window_bounds = array<i64: 32, 128>}, {pipeline_mode = #tpu.pipeline_mode<synchronous>, transform_indices = @transform_2, window_bounds = array<i64: 1, 128>}, {pipeline_mode = #tpu.pipeline_mode<synchronous>, transform_indices = @transform_3, window_bounds = array<i64: 128, 128>}, {pipeline_mode = #tpu.pipeline_mode<synchronous>, transform_indices = @transform_4, window_bounds = array<i64: 1, 128>}, {pipeline_mode = #tpu.pipeline_mode<synchronous>, transform_indices = @transform_5, window_bounds = array<i64: 128, 128>}, {pipeline_mode = #tpu.pipeline_mode<synchronous>, transform_indices = @transform_6, window_bounds = array<i64: 1, 128>}, {pipeline_mode = #tpu.pipeline_mode<synchronous>, transform_indices = @transform_7, window_bounds = array<i64: 128, 128>}, {pipeline_mode = #tpu.pipeline_mode<synchronous>, transform_indices = @transform_8, window_bounds = array<i64: 1, 128>}, {pipeline_mode = #tpu.pipeline_mode<synchronous>, transform_indices = @transform_9, window_bounds = array<i64: 128, 128>}, {pipeline_mode = #tpu.pipeline_mode<synchronous>, transform_indices = @transform_10, window_bounds = array<i64: 1, 128>}, {transform_indices = @transform_11, window_bounds = array<i64: 8, 128>}]} {
    %c0 = arith.constant 0 : index
    %c0_0 = arith.constant 0 : index
    %0 = vector.load %arg1[%c0, %c0_0] : memref<8x32xf32, #tpu.memory_space<vmem>>, vector<8x32xf32>
    %1 = arith.truncf %0 : vector<8x32xf32> to vector<8x32xbf16>
    %c0_1 = arith.constant 0 : index
    %c0_2 = arith.constant 0 : index
    %2 = vector.load %arg2[%c0_1, %c0_2] : memref<32x128xbf16, #tpu.memory_space<vmem>>, vector<32x128xbf16>
    %cst = arith.constant dense<0.000000e+00> : vector<8x128xf32>
    %3 = tpu.matmul %1, %2, %cst {dimension_numbers = #tpu.dot_dimension_numbers<[1], [0], [0], [1], [0, 0, 1, 1], [], []>} : vector<8x32xbf16>, vector<32x128xbf16>, vector<8x128xf32> -> vector<8x128xf32>
    %c0_3 = arith.constant 0 : index
    %c0_4 = arith.constant 0 : index
    %4 = vector.load %arg3[%c0_3, %c0_4] : memref<1x128xf32, #tpu.memory_space<vmem>>, vector<1x128xf32>
    %5 = vector.broadcast %4 : vector<1x128xf32> to vector<8x128xf32>
    %6 = arith.addf %3, %5 : vector<8x128xf32>
    %cst_5 = arith.constant 0.000000e+00 : f32
    %7 = vector.broadcast %cst_5 : f32 to vector<8x128xf32>
    %8 = arith.maximumf %6, %7 : vector<8x128xf32>
    %9 = arith.truncf %8 : vector<8x128xf32> to vector<8x128xbf16>
    %c0_6 = arith.constant 0 : index
    %c0_7 = arith.constant 0 : index
    %10 = vector.load %arg4[%c0_6, %c0_7] : memref<128x128xbf16, #tpu.memory_space<vmem>>, vector<128x128xbf16>
    %cst_8 = arith.constant dense<0.000000e+00> : vector<8x128xf32>
    %11 = tpu.matmul %9, %10, %cst_8 {dimension_numbers = #tpu.dot_dimension_numbers<[1], [0], [0], [1], [0, 0, 1, 1], [], []>} : vector<8x128xbf16>, vector<128x128xbf16>, vector<8x128xf32> -> vector<8x128xf32>
    %c0_9 = arith.constant 0 : index
    %c0_10 = arith.constant 0 : index
    %12 = vector.load %arg5[%c0_9, %c0_10] : memref<1x128xf32, #tpu.memory_space<vmem>>, vector<1x128xf32>
    %13 = vector.broadcast %12 : vector<1x128xf32> to vector<8x128xf32>
    %14 = arith.addf %11, %13 : vector<8x128xf32>
    %cst_11 = arith.constant 0.000000e+00 : f32
    %15 = vector.broadcast %cst_11 : f32 to vector<8x128xf32>
    %16 = arith.maximumf %14, %15 : vector<8x128xf32>
    %17 = arith.addf %8, %16 : vector<8x128xf32>
    %18 = arith.truncf %17 : vector<8x128xf32> to vector<8x128xbf16>
    %c0_12 = arith.constant 0 : index
    %c0_13 = arith.constant 0 : index
    %19 = vector.load %arg6[%c0_12, %c0_13] : memref<128x128xbf16, #tpu.memory_space<vmem>>, vector<128x128xbf16>
    %cst_14 = arith.constant dense<0.000000e+00> : vector<8x128xf32>
    %20 = tpu.matmul %18, %19, %cst_14 {dimension_numbers = #tpu.dot_dimension_numbers<[1], [0], [0], [1], [0, 0, 1, 1], [], []>} : vector<8x128xbf16>, vector<128x128xbf16>, vector<8x128xf32> -> vector<8x128xf32>
    %c0_15 = arith.constant 0 : index
    %c0_16 = arith.constant 0 : index
    %21 = vector.load %arg7[%c0_15, %c0_16] : memref<1x128xf32, #tpu.memory_space<vmem>>, vector<1x128xf32>
    %22 = vector.broadcast %21 : vector<1x128xf32> to vector<8x128xf32>
    %23 = arith.addf %20, %22 : vector<8x128xf32>
    %cst_17 = arith.constant 0.000000e+00 : f32
    %24 = vector.broadcast %cst_17 : f32 to vector<8x128xf32>
    %25 = arith.maximumf %23, %24 : vector<8x128xf32>
    %26 = arith.addf %17, %25 : vector<8x128xf32>
    %27 = arith.truncf %26 : vector<8x128xf32> to vector<8x128xbf16>
    %c0_18 = arith.constant 0 : index
    %c0_19 = arith.constant 0 : index
    %28 = vector.load %arg8[%c0_18, %c0_19] : memref<128x128xbf16, #tpu.memory_space<vmem>>, vector<128x128xbf16>
    %cst_20 = arith.constant dense<0.000000e+00> : vector<8x128xf32>
    %29 = tpu.matmul %27, %28, %cst_20 {dimension_numbers = #tpu.dot_dimension_numbers<[1], [0], [0], [1], [0, 0, 1, 1], [], []>} : vector<8x128xbf16>, vector<128x128xbf16>, vector<8x128xf32> -> vector<8x128xf32>
    %c0_21 = arith.constant 0 : index
    %c0_22 = arith.constant 0 : index
    %30 = vector.load %arg9[%c0_21, %c0_22] : memref<1x128xf32, #tpu.memory_space<vmem>>, vector<1x128xf32>
    %31 = vector.broadcast %30 : vector<1x128xf32> to vector<8x128xf32>
    %32 = arith.addf %29, %31 : vector<8x128xf32>
    %cst_23 = arith.constant 0.000000e+00 : f32
    %33 = vector.broadcast %cst_23 : f32 to vector<8x128xf32>
    %34 = arith.maximumf %32, %33 : vector<8x128xf32>
    %35 = arith.addf %26, %34 : vector<8x128xf32>
    %36 = arith.truncf %35 : vector<8x128xf32> to vector<8x128xbf16>
    %c0_24 = arith.constant 0 : index
    %c0_25 = arith.constant 0 : index
    %37 = vector.load %arg10[%c0_24, %c0_25] : memref<128x128xbf16, #tpu.memory_space<vmem>>, vector<128x128xbf16>
    %cst_26 = arith.constant dense<0.000000e+00> : vector<8x128xf32>
    %38 = tpu.matmul %36, %37, %cst_26 {dimension_numbers = #tpu.dot_dimension_numbers<[1], [0], [0], [1], [0, 0, 1, 1], [], []>} : vector<8x128xbf16>, vector<128x128xbf16>, vector<8x128xf32> -> vector<8x128xf32>
    %c0_27 = arith.constant 0 : index
    %c0_28 = arith.constant 0 : index
    %39 = vector.load %arg11[%c0_27, %c0_28] : memref<1x128xf32, #tpu.memory_space<vmem>>, vector<1x128xf32>
    %40 = vector.broadcast %39 : vector<1x128xf32> to vector<8x128xf32>
    %41 = arith.addf %38, %40 : vector<8x128xf32>
    %c0_29 = arith.constant 0 : index
    %c0_30 = arith.constant 0 : index
    %42 = vector.load %arg12[%c0_29, %c0_30] : memref<8x128xf32, #tpu.memory_space<vmem>>, vector<8x128xf32>
    tpu.vector_store %arg12[%c0_29, %c0_30], %41 {strides = array<i32>} : memref<8x128xf32, #tpu.memory_space<vmem>>, vector<8x128xf32>,
    return
  }
  func.func @transform_0(%arg0: i32) -> (i32, i32) {
    %c0_i32 = arith.constant 0 : i32
    %c0_i32_0 = arith.constant 0 : i32
    return %arg0, %c0_i32 : i32, i32
  }
  func.func @transform_1(%arg0: i32) -> (i32, i32) {
    %c0_i32 = arith.constant 0 : i32
    %c0_i32_0 = arith.constant 0 : i32
    %c0_i32_1 = arith.constant 0 : i32
    return %c0_i32, %c0_i32_0 : i32, i32
  }
  func.func @transform_2(%arg0: i32) -> (i32, i32) {
    %c0_i32 = arith.constant 0 : i32
    %c0_i32_0 = arith.constant 0 : i32
    %c0_i32_1 = arith.constant 0 : i32
    return %c0_i32, %c0_i32_0 : i32, i32
  }
  func.func @transform_3(%arg0: i32) -> (i32, i32) {
    %c0_i32 = arith.constant 0 : i32
    %c0_i32_0 = arith.constant 0 : i32
    %c0_i32_1 = arith.constant 0 : i32
    return %c0_i32, %c0_i32_0 : i32, i32
  }
  func.func @transform_4(%arg0: i32) -> (i32, i32) {
    %c0_i32 = arith.constant 0 : i32
    %c0_i32_0 = arith.constant 0 : i32
    %c0_i32_1 = arith.constant 0 : i32
    return %c0_i32, %c0_i32_0 : i32, i32
  }
  func.func @transform_5(%arg0: i32) -> (i32, i32) {
    %c0_i32 = arith.constant 0 : i32
    %c0_i32_0 = arith.constant 0 : i32
    %c0_i32_1 = arith.constant 0 : i32
    return %c0_i32, %c0_i32_0 : i32, i32
  }
  func.func @transform_6(%arg0: i32) -> (i32, i32) {
    %c0_i32 = arith.constant 0 : i32
    %c0_i32_0 = arith.constant 0 : i32
    %c0_i32_1 = arith.constant 0 : i32
    return %c0_i32, %c0_i32_0 : i32, i32
  }
  func.func @transform_7(%arg0: i32) -> (i32, i32) {
    %c0_i32 = arith.constant 0 : i32
    %c0_i32_0 = arith.constant 0 : i32
    %c0_i32_1 = arith.constant 0 : i32
    return %c0_i32, %c0_i32_0 : i32, i32
  }
  func.func @transform_8(%arg0: i32) -> (i32, i32) {
    %c0_i32 = arith.constant 0 : i32
    %c0_i32_0 = arith.constant 0 : i32
    %c0_i32_1 = arith.constant 0 : i32
    return %c0_i32, %c0_i32_0 : i32, i32
  }
  func.func @transform_9(%arg0: i32) -> (i32, i32) {
    %c0_i32 = arith.constant 0 : i32
    %c0_i32_0 = arith.constant 0 : i32
    %c0_i32_1 = arith.constant 0 : i32
    return %c0_i32, %c0_i32_0 : i32, i32
  }
  func.func @transform_10(%arg0: i32) -> (i32, i32) {
    %c0_i32 = arith.constant 0 : i32
    %c0_i32_0 = arith.constant 0 : i32
    %c0_i32_1 = arith.constant 0 : i32
    return %c0_i32, %c0_i32_0 : i32, i32
  }
  func.func @transform_11(%arg0: i32) -> (i32, i32) {
    %c0_i32 = arith.constant 0 : i32
    %c0_i32_0 = arith.constant 0 : i32
    return %arg0, %c0_i32 : i32, i32
  }
}

</mosaic_0001>

<bundles_post_ra>
// kernel: encoder_forward.1
= control target key start
LH: loop header
LB: loop body
LE: loop exit
PB: predicated region body
PF: predicated region fallthrough
CT: control target
= control target key end

     0   :  { %16 = vsyncpa [#allocation3], 0  ;;  %s1172_s0 = inlined_call_operand.hbm [shape: f32[8,32], index: 0, kind: input, shape index: {}]   ;;  %s1173_s1 = inlined_call_operand.vmem [shape: bf16[32,128], index: 1, kind: input, shape index: {}]   ;;  %s1174_s2 = inlined_call_operand.vmem [shape: f32[1,128], index: 2, kind: input, shape index: {}]   ;;  %s1175_s3 = inlined_call_operand.hbm [shape: bf16[128,128], index: 3, kind: input, shape index: {}]   ;;  %s1176_s4 = inlined_call_operand.vmem [shape: f32[1,128], index: 4, kind: input, shape index: {}]   ;;  %s1177_s5 = inlined_call_operand.hbm [shape: bf16[128,128], index: 5, kind: input, shape index: {}]   ;;  %s1178_s6 = inlined_call_operand.vmem [shape: f32[1,128], index: 6, kind: input, shape index: {}]   ;;  %s1179_s7 = inlined_call_operand.hbm [shape: bf16[128,128], index: 7, kind: input, shape index: {}]   ;;  %s1180_s8 = inlined_call_operand.vmem [shape: f32[1,128], index: 8, kind: input, shape index: {}]   ;;  %s1181_s9 = inlined_call_operand.hbm [shape: bf16[128,128], index: 9, kind: input, shape index: {}]   ;;  %s1182_s10 = inlined_call_operand.vmem [shape: f32[1,128], index: 10, kind: input, shape index: {}]   ;;  %s1183_s11 = inlined_call_operand.vmem [shape: f32[8,128], index: 11, kind: output, shape index: {}]  }
   0x1   :  { %17 = vsyncpa [#allocation5], 0 }
   0x2   :  { %18 = vsyncpa [#allocation8], 0  ;;  %s963_s17 = smov [#allocation4]   ;;  %s847_s21 = scalar_lea.hbm %s1175_s3, 1024 }
   0x3   :  { %s38_s18 = sshll.u32 %s963_s17, 4  ;;  %p848_p0 = scmp.ne.s32.totalorder %s1175_s3, %s847_s21  ;;  %s39_s18 = int_to_ptr.vmem [resolvable:$true] %s38_s18 }
   0x4   :  { %p851_p1 = scmp.lt.u32.totalorder %s847_s21, %s1175_s3 }
   0x6   :  { %p853_p2 = pnand %p851_p1, %p848_p0 }
   0x8   :  { %856 = shalt.err (!%p853_p2)
}
   0x9   :  { %s857_s26 = scalar_lea.vmem %s39_s18, 1024  ;;  %p862_p4 = scmp.lt.s32.totalorder %s39_s18, %s39_s18 }
   0xa   :  { %p858_p3 = scmp.ne.s32.totalorder %s39_s18, %s857_s26  ;;  %p863_p5 = scmp.lt.s32.totalorder %s857_s26, %s857_s26 }
   0xc   :  { %p864_p6 = por %p863_p5, %p862_p4 }
   0xe   :  { %p865_p7 = pnand %p864_p6, %p858_p3 }
  0x10   :  { %868 = shalt.err (!%p865_p7)
}
  0x11   :  { %s964_s27 = smov 64   ;;  %s965_s28 = smov 4  }
  0x12   :  { %44 = dma.hbm_to_vmem [thread:$0]  %s1175_s3, 1024, %s39_s18, [#allocation5], %s964_s27, %s964_s27, %s965_s28  }
  0x13   :  { %s966_s12 = smov [#allocation7]   ;;  %s967_s14 = smov [#allocation2]  }
  0x14   :  { %s66_s13 = sshll.u32 %s966_s12, 4  ;;  %s25_s15 = sshll.u32 %s967_s14, 4  ;;  %s67_s13 = int_to_ptr.vmem [resolvable:$true] %s66_s13  ;;  %s26_s15 = int_to_ptr.vmem [resolvable:$true] %s25_s15 }
  0x15   :  { %s869_s19 = scalar_lea.hbm %s1179_s7, 1024 }
  0x16   :  { %p870_p8 = scmp.ne.s32.totalorder %s1179_s7, %s869_s19  ;;  %p873_p9 = scmp.lt.u32.totalorder %s869_s19, %s1179_s7 }
  0x18   :  { %p875_p10 = pnand %p873_p9, %p870_p8 }
  0x1a   :  { %878 = shalt.err (!%p875_p10)
}
  0x1b   :  { %s879_s3 = scalar_lea.vmem %s67_s13, 1024  ;;  %p884_p12 = scmp.lt.s32.totalorder %s67_s13, %s67_s13 }
  0x1c   :  { %p880_p11 = scmp.ne.s32.totalorder %s67_s13, %s879_s3  ;;  %p885_p13 = scmp.lt.s32.totalorder %s879_s3, %s879_s3 }
  0x1e   :  { %p886_p0 = por %p885_p13, %p884_p12 }
  0x20   :  { %p887_p1 = pnand %p886_p0, %p880_p11 }
  0x22   :  { %890 = shalt.err (!%p887_p1)
}
  0x23   :  { %72 = dma.hbm_to_vmem [thread:$0]  %s1179_s7, 1024, %s67_s13, [#allocation8], %s964_s27, %s964_s27, %s965_s28  }
  0x24   :  { %s891_s29 = scalar_lea.hbm %s1172_s0, 128 }
  0x25   :  { %p892_p2 = scmp.ne.s32.totalorder %s1172_s0, %s891_s29  ;;  %p895_p3 = scmp.lt.u32.totalorder %s891_s29, %s1172_s0 }
  0x27   :  { %p897_p4 = pnand %p895_p3, %p892_p2 }
  0x29   :  { %900 = shalt.err (!%p897_p4)
}
  0x2a   :  { %s901_s17 = scalar_lea.vmem %s26_s15, 128  ;;  %p906_p6 = scmp.lt.s32.totalorder %s26_s15, %s26_s15 }
  0x2b   :  { %p902_p5 = scmp.ne.s32.totalorder %s26_s15, %s901_s17  ;;  %p907_p7 = scmp.lt.s32.totalorder %s901_s17, %s901_s17 }
  0x2d   :  { %p908_p8 = por %p907_p7, %p906_p6 }
  0x2f   :  { %p909_p9 = pnand %p908_p8, %p902_p5 }
  0x31   :  { %912 = shalt.err (!%p909_p9)
}
  0x32   :  { %28 = dma.hbm_to_vmem [thread:$0]  %s1172_s0, 128, %s26_s15, [#allocation3]  }
  0x33   :  { %s968_s19 = smov [#allocation6]   ;;  %s969_s21 = smov [#allocation9]  }
  0x34   :  { %s52_s20 = sshll.u32 %s968_s19, 4  ;;  %s80_s22 = sshll.u32 %s969_s21, 4  ;;  %s53_s20 = int_to_ptr.vmem [resolvable:$true] %s52_s20  ;;  %s81_s22 = int_to_ptr.vmem [resolvable:$true] %s80_s22 }
  0x35   :  { %s913_s18 = scalar_lea.hbm %s1177_s5, 1024 }
  0x36   :  { %p914_p10 = scmp.ne.s32.totalorder %s1177_s5, %s913_s18  ;;  %p917_p11 = scmp.lt.u32.totalorder %s913_s18, %s1177_s5 }
  0x38   :  { %p919_p12 = pnand %p917_p11, %p914_p10 }
  0x3a   :  { %922 = shalt.err (!%p919_p12)
}
  0x3b   :  { %s923_s0 = scalar_lea.vmem %s53_s20, 1024  ;;  %p928_p0 = scmp.lt.s32.totalorder %s53_s20, %s53_s20 }
  0x3c   :  { %p924_p13 = scmp.ne.s32.totalorder %s53_s20, %s923_s0  ;;  %p929_p1 = scmp.lt.s32.totalorder %s923_s0, %s923_s0 }
  0x3e   :  { %p930_p2 = por %p929_p1, %p928_p0 }
  0x40   :  { %p931_p3 = pnand %p930_p2, %p924_p13 }
  0x42   :  { %934 = shalt.err (!%p931_p3)
}
  0x43   :  { %58 = dma.hbm_to_vmem [thread:$0]  %s1177_s5, 1024, %s53_s20, [#allocation5], %s964_s27, %s964_s27, %s965_s28  }
  0x44   :  { %s935_s16 = scalar_lea.hbm %s1181_s9, 1024 }
  0x45   :  { %p936_p4 = scmp.ne.s32.totalorder %s1181_s9, %s935_s16  ;;  %p939_p5 = scmp.lt.u32.totalorder %s935_s16, %s1181_s9 }
  0x47   :  { %p941_p6 = pnand %p939_p5, %p936_p4 }
  0x49   :  { %944 = shalt.err (!%p941_p6)
}
  0x4a   :  { %s945_s21 = scalar_lea.vmem %s81_s22, 1024  ;;  %p950_p8 = scmp.lt.s32.totalorder %s81_s22, %s81_s22 }
  0x4b   :  { %p946_p7 = scmp.ne.s32.totalorder %s81_s22, %s945_s21  ;;  %p951_p9 = scmp.lt.s32.totalorder %s945_s21, %s945_s21 }
  0x4d   :  { %p952_p10 = por %p951_p9, %p950_p8 }
  0x4f   :  { %p953_p11 = pnand %p952_p10, %p946_p7 }
  0x51   :  { %956 = shalt.err (!%p953_p11)
}
  0x52   :  { %86 = dma.hbm_to_vmem [thread:$0]  %s1181_s9, 1024, %s81_s22, [#allocation8], %s964_s27, %s964_s27, %s965_s28  }
  0x53   :  { %957 = dma.done.wait [#allocation3], 128  }
  0x54   :  { %958 = vsyncadd [#allocation3], 4294967168 }
  0x55   :  { %959 = dma.done.wait [#allocation5], 2048  }
  0x56   :  { %960 = vsyncadd [#allocation5], 4294965248 }
  0x57   :  { %961 = dma.done.wait [#allocation8], 2048  }
  0x58   :  { %962 = vsyncadd [#allocation8], 4294965248  ;;  %v970_v0 = vmov 0.0   ;;  %vm971_vm0 = vmmov 0   ;;  %v813_v1 = vld [vmem:[%s1173_s1] sm:$0xff]   ;;  %v814_v2 = vld [vmem:[%s1173_s1 + $0x8] sm:$0xff]  }
  0x59   :  { %716 = vmatprep.subr.bf16.mxu0 %v970_v0  ;;  %720 = vmatprep.mubr.msk.bf16.mxu0 %vm971_vm0, %v970_v0  ;;  %v105_v3 = vld [vmem:[#allocation2] sm:$0xff]  ;;  %v815_v4 = vld [vmem:[#allocation4] sm:$0xff]   ;;  %v816_v6 = vld [vmem:[#allocation4 + $0x8] sm:$0xff]   ;;  %vm130_vm1 = vcmask 261120  }
  0x5a   :  { %724 = vmatprep.subr.bf16.mxu1 %v970_v0  ;;  %740 = vmatprep.mubr.msk.bf16.mxu1 %vm971_vm0, %v970_v0  ;;  %v106_v5 = vpack.c.bf16 %v105_v3, %v105_v3  ;;  %v817_v7 = vld [vmem:[#allocation4 + $0x10] sm:$0xff]   ;;  %v818_v8 = vld [vmem:[#allocation4 + $0x18] sm:$0xff]   ;;  %v819_v9 = vld [vmem:[#allocation4 + $0x20] sm:$0xff]  }
  0x5b   :  { %717 = vmatpush3.bf16.msra.mxu0 %v813_v1  ;;  %725 = vmatpush3.bf16.msra.mxu1 %v815_v4  ;;  %v820_v10 = vld [vmem:[#allocation4 + $0x28] sm:$0xff]   ;;  %v821_v11 = vld [vmem:[#allocation4 + $0x30] sm:$0xff]   ;;  %v822_v12 = vld [vmem:[#allocation4 + $0x38] sm:$0xff]  }
  0x5c   :  { %718 = vmatprep.subr.bf16.mxu0 %v970_v0  ;;  %726 = vmatprep.subr.bf16.mxu1 %v970_v0  ;;  %v823_v13 = vld [vmem:[#allocation6] sm:$0xff]   ;;  %v824_v14 = vld [vmem:[#allocation6 + $0x8] sm:$0xff]   ;;  %v825_v15 = vld [vmem:[#allocation6 + $0x10] sm:$0xff]  }
  0x5d   :  { %v826_v16 = vld [vmem:[#allocation6 + $0x18] sm:$0xff]   ;;  %v827_v17 = vld [vmem:[#allocation6 + $0x20] sm:$0xff]   ;;  %v828_v18 = vld [vmem:[#allocation6 + $0x28] sm:$0xff]  }
  0x5e   :  { %v637_v19 = vld [vmem:[%s1174_s2] ss:$0 sm:$0xff]  ;;  %v829_v27 = vld [vmem:[#allocation6 + $0x30] sm:$0xff]   ;;  %v830_v28 = vld [vmem:[#allocation6 + $0x38] sm:$0xff]  }
  0x5f   :  { %719 = vmatpush3.bf16.msra.mxu0 %v814_v2  ;;  %727 = vmatpush3.bf16.msra.mxu1 %v816_v6  ;;  %v831_v29 = vld [vmem:[#allocation7] sm:$0xff]   ;;  %v832_v30 = vld [vmem:[#allocation7 + $0x8] sm:$0xff]   ;;  %v833_v31 = vld [vmem:[#allocation7 + $0x10] sm:$0xff]  }
  0x60   :  { %744 = vmatprep.subr.bf16.mxu0 %v970_v0  ;;  %728 = vmatprep.subr.bf16.mxu1 %v970_v0  ;;  %v834_v32 = vld [vmem:[#allocation7 + $0x18] sm:$0xff]   ;;  %v835_v33 = vld [vmem:[#allocation7 + $0x20] sm:$0xff]   ;;  %v836_v34 = vld [vmem:[#allocation7 + $0x28] sm:$0xff]  }
  0x61   :  { %v641_v35 = vld [vmem:[%s1176_s4] ss:$0 sm:$0xff]  ;;  %v837_v44 = vld [vmem:[#allocation7 + $0x30] sm:$0xff]   ;;  %v838_v45 = vld [vmem:[#allocation7 + $0x38] sm:$0xff]  }
  0x62   :  { %721 = vmatmul.mubr.msk.bf16.vlgmr.msra.gmra.mrb[0].mxu0 %vm130_vm1, %v106_v5  ;;  %v839_v46 = vld [vmem:[#allocation9] sm:$0xff]   ;;  %v840_v47 = vld [vmem:[#allocation9 + $0x8] sm:$0xff]   ;;  %v841_v48 = vld [vmem:[#allocation9 + $0x10] sm:$0xff]  }
  0x63   :  { %760 = vmatprep.mubr.msk.bf16.mxu0 %vm971_vm0, %v970_v0  ;;  %729 = vmatpush3.bf16.msra.mxu1 %v817_v7  ;;  %v842_v49 = vld [vmem:[#allocation9 + $0x18] sm:$0xff]   ;;  %v843_v50 = vld [vmem:[#allocation9 + $0x20] sm:$0xff]   ;;  %v844_v51 = vld [vmem:[#allocation9 + $0x28] sm:$0xff]  }
  0x64   :  { %730 = vmatprep.subr.bf16.mxu1 %v970_v0  ;;  %745 = vmatpush3.bf16.msra.mxu0 %v823_v13  ;;  %v650_v52 = vld [vmem:[%s1178_s6] ss:$0 sm:$0xff]  ;;  %v845_v61 = vld [vmem:[#allocation9 + $0x30] sm:$0xff]   ;;  %v846_v62 = vld [vmem:[#allocation9 + $0x38] sm:$0xff]  }
  0x65   :  { %746 = vmatprep.subr.bf16.mxu0 %v970_v0  ;;  %v659_v63 = vld [vmem:[%s1180_s8] ss:$0 sm:$0xff] }
  0x67   :  { %731 = vmatpush3.bf16.msra.mxu1 %v818_v8 }
  0x68   :  { %732 = vmatprep.subr.bf16.mxu1 %v970_v0  ;;  %747 = vmatpush3.bf16.msra.mxu0 %v824_v14 }
  0x69   :  { %748 = vmatprep.subr.bf16.mxu0 %v970_v0 }
  0x6b   :  { %733 = vmatpush3.bf16.msra.mxu1 %v819_v9  ;;  %v668_v9 = vld [vmem:[%s1182_s10] ss:$0 sm:$0xff] }
  0x6c   :  { %734 = vmatprep.subr.bf16.mxu1 %v970_v0  ;;  %749 = vmatpush3.bf16.msra.mxu0 %v825_v15 }
  0x6d   :  { %750 = vmatprep.subr.bf16.mxu0 %v970_v0 }
  0x6f   :  { %735 = vmatpush3.bf16.msra.mxu1 %v820_v10 }
  0x70   :  { %736 = vmatprep.subr.bf16.mxu1 %v970_v0  ;;  %751 = vmatpush3.bf16.msra.mxu0 %v826_v16 }
  0x71   :  { %752 = vmatprep.subr.bf16.mxu0 %v970_v0 }
  0x73   :  { %737 = vmatpush3.bf16.msra.mxu1 %v821_v11 }
  0x74   :  { %738 = vmatprep.subr.bf16.mxu1 %v970_v0  ;;  %753 = vmatpush3.bf16.msra.mxu0 %v827_v17 }
  0x75   :  { %754 = vmatprep.subr.bf16.mxu0 %v970_v0 }
  0x77   :  { %739 = vmatpush3.bf16.msra.mxu1 %v822_v12 }
  0x78   :  { %764 = vmatprep.subr.bf16.mxu1 %v970_v0  ;;  %755 = vmatpush3.bf16.msra.mxu0 %v828_v18 }
  0x79   :  { %756 = vmatprep.subr.bf16.mxu0 %v970_v0 }
  0x7c   :  { %757 = vmatpush3.bf16.msra.mxu0 %v829_v27 }
  0x7d   :  { %758 = vmatprep.subr.bf16.mxu0 %v970_v0 }
  0x80   :  { %759 = vmatpush3.bf16.msra.mxu0 %v830_v28 }
  0x81   :  { %784 = vmatprep.subr.bf16.mxu0 %v970_v0 }
 0x135   :  { %v168_v20 = vpop.f32.mrb[0].mxu0 }
 0x136   :  { %v169_v21 = vadd.f32 %v637_v19, %v168_v20  ;;  %v722_v22 = vpop.f32.mrb[1].mxu0 }
 0x137   :  { %v171_v23 = vpop.f32.mrb[2].mxu0 }
 0x138   :  { %v174_v24 = vmax.f32 %v169_v21, 0.0  ;;  %v723_v25 = vpop.f32.mrb[3].mxu0 }
 0x13a   :  { %v175_v26 = vpack.c.bf16 %v174_v24, %v174_v24 }
 0x13c   :  { %741 = vmatmul.mubr.bf16.vlgmr.msra.gmra.mrb[0].mxu1 %v175_v26 }
 0x13d   :  { %780 = vmatprep.mubr.msk.bf16.mxu1 %vm971_vm0, %v970_v0  ;;  %765 = vmatpush3.bf16.msra.mxu1 %v831_v29 }
 0x13e   :  { %766 = vmatprep.subr.bf16.mxu1 %v970_v0 }
 0x141   :  { %767 = vmatpush3.bf16.msra.mxu1 %v832_v30 }
 0x142   :  { %768 = vmatprep.subr.bf16.mxu1 %v970_v0 }
 0x145   :  { %769 = vmatpush3.bf16.msra.mxu1 %v833_v31 }
 0x146   :  { %770 = vmatprep.subr.bf16.mxu1 %v970_v0 }
 0x149   :  { %771 = vmatpush3.bf16.msra.mxu1 %v834_v32 }
 0x14a   :  { %772 = vmatprep.subr.bf16.mxu1 %v970_v0 }
 0x14d   :  { %773 = vmatpush3.bf16.msra.mxu1 %v835_v33 }
 0x14e   :  { %774 = vmatprep.subr.bf16.mxu1 %v970_v0 }
 0x151   :  { %775 = vmatpush3.bf16.msra.mxu1 %v836_v34 }
 0x152   :  { %776 = vmatprep.subr.bf16.mxu1 %v970_v0 }
 0x155   :  { %777 = vmatpush3.bf16.msra.mxu1 %v837_v44 }
 0x156   :  { %778 = vmatprep.subr.bf16.mxu1 %v970_v0 }
 0x159   :  { %779 = vmatpush3.bf16.msra.mxu1 %v838_v45 }
 0x20f   :  { %v281_v36 = vpop.f32.mrb[0].mxu1 }
 0x210   :  { %v282_v37 = vadd.f32 %v641_v35, %v281_v36  ;;  %v742_v38 = vpop.f32.mrb[1].mxu1 }
 0x211   :  { %v284_v39 = vpop.f32.mrb[2].mxu1 }
 0x212   :  { %v287_v40 = vmax.f32 %v282_v37, 0.0  ;;  %v743_v41 = vpop.f32.mrb[3].mxu1 }
 0x214   :  { %v288_v42 = vadd.f32 %v287_v40, %v174_v24 }
 0x216   :  { %v289_v43 = vpack.c.bf16 %v288_v42, %v288_v42 }
 0x218   :  { %761 = vmatmul.mubr.bf16.vlgmr.msra.gmra.mrb[4].mxu0 %v289_v43 }
 0x219   :  { %800 = vmatprep.mubr.msk.bf16.mxu0 %vm971_vm0, %v970_v0  ;;  %785 = vmatpush3.bf16.msra.mxu0 %v839_v46 }
 0x21a   :  { %786 = vmatprep.subr.bf16.mxu0 %v970_v0 }
 0x21d   :  { %787 = vmatpush3.bf16.msra.mxu0 %v840_v47 }
 0x21e   :  { %788 = vmatprep.subr.bf16.mxu0 %v970_v0 }
 0x221   :  { %789 = vmatpush3.bf16.msra.mxu0 %v841_v48 }
 0x222   :  { %790 = vmatprep.subr.bf16.mxu0 %v970_v0 }
 0x225   :  { %791 = vmatpush3.bf16.msra.mxu0 %v842_v49 }
 0x226   :  { %792 = vmatprep.subr.bf16.mxu0 %v970_v0 }
 0x229   :  { %793 = vmatpush3.bf16.msra.mxu0 %v843_v50 }
 0x22a   :  { %794 = vmatprep.subr.bf16.mxu0 %v970_v0 }
 0x22d   :  { %795 = vmatpush3.bf16.msra.mxu0 %v844_v51 }
 0x22e   :  { %796 = vmatprep.subr.bf16.mxu0 %v970_v0 }
 0x231   :  { %797 = vmatpush3.bf16.msra.mxu0 %v845_v61 }
 0x232   :  { %798 = vmatprep.subr.bf16.mxu0 %v970_v0 }
 0x235   :  { %799 = vmatpush3.bf16.msra.mxu0 %v846_v62 }
 0x2eb   :  { %v395_v53 = vpop.f32.mrb[4].mxu0 }
 0x2ec   :  { %v396_v54 = vadd.f32 %v650_v52, %v395_v53  ;;  %v762_v55 = vpop.f32.mrb[5].mxu0 }
 0x2ed   :  { %v398_v56 = vpop.f32.mrb[6].mxu0 }
 0x2ee   :  { %v401_v57 = vmax.f32 %v396_v54, 0.0  ;;  %v763_v58 = vpop.f32.mrb[7].mxu0 }
 0x2f0   :  { %v402_v59 = vadd.f32 %v401_v57, %v288_v42 }
 0x2f2   :  { %v403_v60 = vpack.c.bf16 %v402_v59, %v402_v59 }
 0x2f4   :  { %781 = vmatmul.mubr.bf16.vlgmr.msra.gmra.mrb[4].mxu1 %v403_v60 }
 0x3c7   :  { %v509_v1 = vpop.f32.mrb[4].mxu1 }
 0x3c8   :  { %v510_v2 = vadd.f32 %v659_v63, %v509_v1  ;;  %v782_v3 = vpop.f32.mrb[5].mxu1 }
 0x3c9   :  { %v512_v4 = vpop.f32.mrb[6].mxu1 }
 0x3ca   :  { %v515_v5 = vmax.f32 %v510_v2, 0.0  ;;  %v783_v6 = vpop.f32.mrb[7].mxu1 }
 0x3cc   :  { %v516_v7 = vadd.f32 %v515_v5, %v402_v59 }
 0x3ce   :  { %v517_v8 = vpack.c.bf16 %v516_v7, %v516_v7 }
 0x3d0   :  { %801 = vmatmul.mubr.bf16.vlgmr.msra.gmra.mrb[8].mxu0 %v517_v8 }
 0x4a3   :  { %v623_v0 = vpop.f32.mrb[8].mxu0 }
 0x4a4   :  { %v624_v10 = vadd.f32 %v668_v9, %v623_v0  ;;  %v802_v11 = vpop.f32.mrb[9].mxu0 }
 0x4a5   :  { %v626_v12 = vpop.f32.mrb[10].mxu0 }
 0x4a6   :  { %629 = vst [vmem:[%s1183_s11] sm:$0xff] %v624_v10  ;;  %v803_v13 = vpop.f32.mrb[11].mxu0 }
 0x4a7   :  { %634 = vsyncpa [#allocation3], 1 }
 0x4a8   :  { %635 = vsyncpa [#allocation5], 1 }
 0x4a9   :  { %636 = vsyncpa [#allocation8], 1 }

</bundles_post_ra>
